<compile_context>
chip_gen: v7x
topology: tpu7x:2x2x1
jax: 0.10.0
libtpu: 0.0.40
codegen_flags: <defaults>
</compile_context>

<pallas_src>
import functools

import jax
import jax.numpy as jnp
from jax.experimental import pallas as pl
from jax.experimental.pallas import tpu as pltpu


# ---------------------------------------------------------------------------
# Generation-dependent VMEM budgets + capability probe
# ---------------------------------------------------------------------------
@functools.lru_cache(maxsize=1)
def _vmem_budgets():
    cap = 64 * 1024 * 1024                     # conservative default (v7x per-TC)
    try:
        info_cap = int(pltpu.get_tpu_info().vmem_capacity_bytes)
        if info_cap > 0:
            cap = info_cap
    except Exception:
        pass
    limit = min(int(0.80 * cap), 100 * 1024 * 1024)   # scoped-VMEM limit per call
    fused = min(int(0.45 * cap), 72 * 1024 * 1024)    # budget for single-call fused MLP
    return limit, fused


def _vmem_limit_bytes():
    return _vmem_budgets()[0]


def _fused_vmem_budget():
    return _vmem_budgets()[1]


@functools.lru_cache(maxsize=1)
def _buffered_one_ok():
    """Probe (outside jit) whether pipeline_mode=pl.Buffered(1) is supported."""
    try:
        def _copy(x_ref, o_ref):
            o_ref[...] = x_ref[...]

        f = pl.pallas_call(
            _copy,
            out_shape=jax.ShapeDtypeStruct((8, 128), jnp.float32),
            grid=(1,),
            in_specs=[pl.BlockSpec((8, 128), lambda i: (0, 0),
                                   pipeline_mode=pl.Buffered(1))],
            out_specs=pl.BlockSpec((8, 128), lambda i: (0, 0)),
        )
        jax.block_until_ready(f(jnp.zeros((8, 128), jnp.float32)))
        return True
    except Exception:
        return False


# ---------------------------------------------------------------------------
# Padding / tiling helpers
# ---------------------------------------------------------------------------
def _round_up(x, m):
    return ((x + m - 1) // m) * m


def _pad2d(a, rows, cols):
    r, c = a.shape
    if r == rows and c == cols:
        return a
    return jnp.pad(a, ((0, rows - r), (0, cols - c)))


def _pad_linear_params(w, b):
    """Pad (in,out) weight / (out,) bias to lane-aligned (128-multiple) shapes."""
    K, N = w.shape
    Kp, Np = _round_up(K, 128), _round_up(N, 128)
    wp = _pad2d(w, Kp, Np)
    bp = _pad2d(b.reshape(1, N).astype(jnp.float32), 1, Np)
    return wp, bp, N


def _batch_tile(B):
    """Batch tile: multiple of 8, capped at 256 (MXU M dim on v6e/v7x)."""
    tm = min(256, _round_up(B, 8))
    # Keep >=2 batch grid steps when possible so the "parallel" axis can shard
    # across v7x's two TensorCores.
    if B > 8 and pl.cdiv(B, tm) < 2:
        tm = max(8, _round_up((B + 1) // 2, 8))
    return tm


# ---------------------------------------------------------------------------
# Kernel 1: fused multi-layer MLP (Linear [+ReLU]) in a single pallas_call.
# Inter-layer activation stays on-chip (vregs/VMEM), never touches HBM.
# ---------------------------------------------------------------------------
def _fused_mlp_kernel(*refs, n_layers, relu_flags):
    # refs = (x_ref, w0, b0, w1, b1, ..., o_ref); feature dims 128-padded.
    x_ref = refs[0]
    o_ref = refs[1 + 2 * n_layers]
    h = x_ref[...].astype(jnp.float32)
    for li in range(n_layers):
        w_ref = refs[1 + 2 * li]
        b_ref = refs[2 + 2 * li]
        # bf16 x bf16 on the MXU, f32 accumulation.
        h = jnp.dot(h.astype(w_ref.dtype), w_ref[...],
                    preferred_element_type=jnp.float32)
        h = h + b_ref[...].astype(jnp.float32)      # (1, N) broadcast, f32 VPU
        if relu_flags[li]:
            h = jnp.maximum(h, jnp.zeros_like(h))
    o_ref[...] = h.astype(o_ref.dtype)


def fused_mlp_pallas(x, params, relu_flags):
    """o = chain of relu?(h @ W_i + b_i) in ONE pallas_call.

    params: list of (w_pad, b_pad, n_out_orig), feature dims 128-aligned.
    Only the batch axis is tiled ("parallel" grid axis); weights ride along as
    single-buffered full blocks.
    """
    B, K = x.shape
    K0p = params[0][0].shape[0]
    NLp = params[-1][0].shape[1]
    n_out = params[-1][2]
    tm = _batch_tile(B)
    if K != K0p:                                  # zero-pad K only; batch stays ragged
        x = jnp.pad(x, ((0, 0), (0, K0p - K)))

    wmode = {"pipeline_mode": pl.Buffered(1)} if _buffered_one_ok() else {}
    in_specs = [pl.BlockSpec((tm, K0p), lambda i: (i, 0))]
    args = [x]
    for w, b, _ in params:
        Kp, Np = w.shape
        in_specs.append(pl.BlockSpec((Kp, Np), lambda i: (0, 0), **wmode))
        in_specs.append(pl.BlockSpec((1, Np), lambda i: (0, 0), **wmode))
        args.append(w)
        args.append(b)

    flops = 2 * B * sum(int(w.shape[0]) * int(w.shape[1]) for w, _, _ in params)
    bytes_accessed = (int(x.size) * x.dtype.itemsize
                      + sum(int(w.size) * w.dtype.itemsize
                            + int(b.size) * b.dtype.itemsize
                            for w, b, _ in params)
                      + B * NLp * x.dtype.itemsize)

    kernel = functools.partial(
        _fused_mlp_kernel,
        n_layers=len(params),
        relu_flags=tuple(bool(f) for f in relu_flags),
    )
    out = pl.pallas_call(
        kernel,
        out_shape=jax.ShapeDtypeStruct((B, NLp), x.dtype),
        grid=(pl.cdiv(B, tm),),
        in_specs=in_specs,
        out_specs=pl.BlockSpec((tm, NLp), lambda i: (i, 0)),
        compiler_params=pltpu.CompilerParams(
            dimension_semantics=("parallel",),
            vmem_limit_bytes=_vmem_limit_bytes(),
        ),
        cost_estimate=pl.CostEstimate(flops=int(flops), transcendentals=0,
                                      bytes_accessed=int(bytes_accessed)),
    )(*args)
    return out[:, :n_out]


# ---------------------------------------------------------------------------
# Kernel 2: tiled Linear (+ fused ReLU) fallback for large layers.
# Operates on / returns PADDED activations (padded cols are exactly zero).
# ---------------------------------------------------------------------------
def _linear_tiled_kernel(x_ref, w_ref, b_ref, o_ref, acc_ref, *, apply_relu):
    @pl.when(pl.program_id(2) == 0)
    def _init():
        acc_ref[...] = jnp.zeros_like(acc_ref)

    acc_ref[...] += jnp.dot(x_ref[...].astype(w_ref.dtype), w_ref[...],
                            preferred_element_type=jnp.float32)

    # bias + ReLU only in the finalize branch (K axis is a reduction).
    @pl.when(pl.program_id(2) == pl.num_programs(2) - 1)
    def _finalize():
        r = acc_ref[...] + b_ref[...].astype(jnp.float32)
        if apply_relu:
            r = jnp.maximum(r, jnp.zeros_like(r))
        o_ref[...] = r.astype(o_ref.dtype)


def linear_pallas_padded(xp, w_pad, b_pad, *, apply_relu=False,
                         tm=None, tn=256, tk=1024):
    """out = relu?(xp @ W + b) over a tiled, double-buffered (tm, tn, tk) grid.

    xp is already K-padded to w_pad.shape[0]; the full padded (B, Np) result
    is returned (padded columns are exactly zero) so MLP chains can thread
    the padded activation without per-layer slice / re-pad round trips.
    """
    B, Kp = xp.shape
    Kp_w, Np = w_pad.shape
    assert Kp == Kp_w, (Kp, Kp_w)
    if tm is None:
        tm = _batch_tile(B)
    tn = min(tn, Np)
    while Np % tn:
        tn //= 2
    tk = min(tk, Kp)
    while Kp % tk:
        tk //= 2

    flops = 2 * B * Kp * Np
    bytes_accessed = (B * Kp * xp.dtype.itemsize
                      + int(w_pad.size) * w_pad.dtype.itemsize
                      + int(b_pad.size) * b_pad.dtype.itemsize
                      + B * Np * xp.dtype.itemsize)

    kernel = functools.partial(_linear_tiled_kernel, apply_relu=apply_relu)
    return pl.pallas_call(
        kernel,
        out_shape=jax.ShapeDtypeStruct((B, Np), xp.dtype),
        grid_spec=pltpu.PrefetchScalarGridSpec(
            num_scalar_prefetch=0,
            grid=(pl.cdiv(B, tm), Np // tn, Kp // tk),
            in_specs=[
                pl.BlockSpec((tm, tk), lambda i, j, k: (i, k)),
                pl.BlockSpec((tk, tn), lambda i, j, k: (k, j)),
                pl.BlockSpec((1, tn), lambda i, j, k: (0, j)),
            ],
            out_specs=pl.BlockSpec((tm, tn), lambda i, j, k: (i, j)),
            scratch_shapes=[pltpu.VMEM((tm, tn), jnp.float32)],
        ),
        compiler_params=pltpu.CompilerParams(
            dimension_semantics=("parallel", "parallel", "arbitrary"),
            vmem_limit_bytes=_vmem_limit_bytes(),
        ),
        cost_estimate=pl.CostEstimate(flops=int(flops), transcendentals=0,
                                      bytes_accessed=int(bytes_accessed)),
    )(xp, w_pad, b_pad)


# ---------------------------------------------------------------------------
# Kernel 3: standalone ReLU (only used when a ReLU is not preceded by Linear).
# ---------------------------------------------------------------------------
def _relu_kernel(x_ref, o_ref):
    x = x_ref[...]
    o_ref[...] = jnp.maximum(x, jnp.zeros_like(x))


def relu_pallas(x):
    B, N = x.shape
    if N % 128 == 0:
        tc = 128
        for cand in (4096, 2048, 1024, 512, 256, 128):
            if N % cand == 0:
                tc = cand
                break
    else:
        tc = N                       # block dim == full array dim (allowed)
    itm = x.dtype.itemsize
    # Byte-bound the row tile: keep each buffer ~<= 4 MiB (safe on v7x 64 MiB).
    rows_cap = max(8, ((4 * 1024 * 1024) // max(1, tc * itm)) // 8 * 8)
    tr = min(512, _round_up(B, 8), rows_cap)
    return pl.pallas_call(
        _relu_kernel,
        out_shape=jax.ShapeDtypeStruct((B, N), x.dtype),
        grid=(pl.cdiv(B, tr), pl.cdiv(N, tc)),
        in_specs=[pl.BlockSpec((tr, tc), lambda i, j: (i, j))],
        out_specs=pl.BlockSpec((tr, tc), lambda i, j: (i, j)),
        compiler_params=pltpu.CompilerParams(
            dimension_semantics=("parallel", "parallel"),
            vmem_limit_bytes=_vmem_limit_bytes(),
        ),
        cost_estimate=pl.CostEstimate(flops=B * N, transcendentals=0,
                                      bytes_accessed=2 * B * N * itm),
    )(x)


# ---------------------------------------------------------------------------
# Segment execution: fused single kernel if it fits VMEM, else tiled per-layer
# ---------------------------------------------------------------------------
def _segment_vmem_bytes(x, tm, params):
    itm = x.dtype.itemsize
    K0p = params[0][0].shape[0]
    NLp = params[-1][0].shape[1]
    w_bytes = sum(int(w.size) * w.dtype.itemsize + int(b.size) * b.dtype.itemsize
                  for w, b, _ in params)
    w_mult = 1 if _buffered_one_ok() else 2          # Buffered(1): fetched once
    widest = max([K0p] + [int(w.shape[1]) for w, _, _ in params])
    act_bytes = 3 * tm * widest * 4                  # live f32 h's + bf16 cast copy
    io_bytes = 2 * tm * (K0p + NLp) * itm            # double-buffered x / out tiles
    return w_mult * w_bytes + io_bytes + act_bytes


def _run_mlp_segment(x, params, relu_flags):
    tm = _batch_tile(x.shape[0])
    if _segment_vmem_bytes(x, tm, params) <= _fused_vmem_budget():
        return fused_mlp_pallas(x, params, relu_flags)
    # Too large for the single-call fused path: per-layer tiled matmul with the
    # trailing ReLU fused into each layer's finalize step.  The PADDED
    # activation is threaded between layers (padded columns are exactly zero:
    # zero-padded W rows/cols and bias), sliced once at the end.
    B, K = x.shape
    K0p = params[0][0].shape[0]
    h = x if K == K0p else jnp.pad(x, ((0, 0), (0, K0p - K)))
    for (w, b, _), relu in zip(params, relu_flags):
        h = linear_pallas_padded(h, w, b, apply_relu=relu)
    return h[:, :params[-1][2]]


# ---------------------------------------------------------------------------
# Layer objects (JAX-side analogues of nn.Module leaves)
# ---------------------------------------------------------------------------
class PallasLayer:
    def __call__(self, x):
        raise NotImplementedError


class Linear(PallasLayer):
    """nn.Linear equivalent; weights stored (in, out) bf16 so kernels do x @ W."""

    def __init__(self, key, in_features, out_features, dtype=jnp.float32):
        kw, kb = jax.random.split(key)
        bound = 1.0 / (in_features ** 0.5)
        w = jax.random.uniform(kw, (in_features, out_features), dtype,
                               minval=-bound, maxval=bound)
        # bf16 weights feed the MXU natively; accumulation stays f32.
        self.w = w.astype(jnp.bfloat16)
        self.b = jax.random.uniform(kb, (out_features,), jnp.float32,
                                    minval=-bound, maxval=bound)

    def __call__(self, x):
        wp, bp, n = _pad_linear_params(self.w, self.b)
        Kp = wp.shape[0]
        xp = x if x.shape[1] == Kp else jnp.pad(x, ((0, 0), (0, Kp - x.shape[1])))
        return linear_pallas_padded(xp, wp, bp, apply_relu=False)[:, :n]


class ReLU(PallasLayer):
    def __call__(self, x):
        return relu_pallas(x)


# ---------------------------------------------------------------------------
# Network: sequential container mirroring the PyTorch module's semantics
# ---------------------------------------------------------------------------
class Network:
    def __init__(self):
        self.modules = []
        self._fwd = None
        self._fwd_cache_key = None

    def add_layer(self, layer):
        name = None
        if isinstance(layer, tuple):
            if len(layer) == 1:
                module = layer[0]
            elif len(layer) == 2:
                module, name = layer
            else:
                raise RuntimeError("Unsupported Signature, Sig: (module, [name])")
        else:
            module = layer
        if not isinstance(module, PallasLayer):
            raise RuntimeError("PallasLayer object is required")
        if name is None:
            name = "l" + str(len(self.modules) + 1)
        # TODO(synk): nn.Module's add_module / reserve_prop registration is
        # host-side bookkeeping with no device-compute equivalent.
        self.modules.append((module, name))

    def add_layers(self, layers):
        for layer in layers:
            self.add_layer(layer)

    def __iadd__(self, other):
        if isinstance(other, list):
            self.add_layers(other)
        else:
            self.add_layer(other)
        return self

    # --- forward plan: peephole-fuse Linear(+ReLU) runs into MLP segments ---
    def _build_plan(self):
        segments = []
        mods = [m for m, _ in self.modules]
        i = 0
        while i < len(mods):
            if isinstance(mods[i], Linear):
                layers = []
                while i < len(mods) and isinstance(mods[i], Linear):
                    lin = mods[i]
                    i += 1
                    relu = False
                    if i < len(mods) and isinstance(mods[i], ReLU):
                        relu = True
                        i += 1
                    layers.append((lin, relu))
                segments.append(("mlp", layers))
            elif isinstance(mods[i], ReLU):
                segments.append(("relu", None))
                i += 1
            else:
                segments.append(("call", mods[i]))
                i += 1
        return segments

    def _compile(self):
        # Warm capability / budget probes OUTSIDE jit.
        _buffered_one_ok()
        _vmem_budgets()
        # Pre-pad every Linear's parameters once (lane-dense, 128-aligned) and
        # bake a jitted forward so per-call Python dispatch/padding is trace-only.
        compiled = []
        for kind, payload in self._build_plan():
            if kind == "mlp":
                params = [_pad_linear_params(lin.w, lin.b) for lin, _ in payload]
                flags = tuple(relu for _, relu in payload)
                compiled.append(("mlp", params, flags))
            else:
                compiled.append((kind, payload, None))

        def fwd(x):
            res = x
            for kind, payload, flags in compiled:
                if kind == "mlp":
                    res = _run_mlp_segment(res, payload, flags)
                elif kind == "relu":
                    res = relu_pallas(res)
                else:
                    res = payload(res)
            return res

        return jax.jit(fwd)

    def forward(self, x):
        key = tuple(id(m) for m, _ in self.modules)
        if self._fwd is None or key != self._fwd_cache_key:
            self._fwd = self._compile()
            self._fwd_cache_key = key
        return self._fwd(x)

    __call__ = forward


# ---------------------------------------------------------------------------
# Demo
# ---------------------------------------------------------------------------
if __name__ == "__main__":
    key = jax.random.PRNGKey(0)
    k_x, k_l1, k_l2 = jax.random.split(key, 3)

    batch, hidden_in, hidden_mid, hidden_out = 8, 32, 64, 16
    x = jax.random.normal(k_x, (batch, hidden_in), jnp.float32)

    net = Network()
    net += [
        Linear(k_l1, hidden_in, hidden_mid),
        (ReLU(), "act1"),
        Linear(k_l2, hidden_mid, hidden_out),
    ]

    out = jax.block_until_ready(net(x))

    # Cross-check against a plain JAX reference (same bf16-rounded weights).
    lin1 = net.modules[0][0]
    lin2 = net.modules[2][0]
    w1 = lin1.w.astype(jnp.float32)
    w2 = lin2.w.astype(jnp.float32)
    ref = jnp.maximum(x @ w1 + lin1.b, 0.0) @ w2 + lin2.b
    assert out.shape == (batch, hidden_out)
    assert jnp.allclose(out, ref, atol=5e-2, rtol=5e-2), float(
        jnp.max(jnp.abs(out - ref)))

    # Exercise the tiled (tm, tn, tk) fallback kernel on the padded chain path.
    kx2, kw2, kb2 = jax.random.split(jax.random.PRNGKey(1), 3)
    x2 = jax.random.normal(kx2, (16, 300), jnp.float32)
    w2b = (jax.random.normal(kw2, (300, 200), jnp.float32) * 0.05).astype(jnp.bfloat16)
    b2 = jax.random.normal(kb2, (200,), jnp.float32)
    wp, bp, n = _pad_linear_params(w2b, b2)
    xp2 = jnp.pad(x2, ((0, 0), (0, wp.shape[0] - x2.shape[1])))
    y2 = jax.block_until_ready(
        linear_pallas_padded(xp2, wp, bp, apply_relu=True)[:, :n])
    ref2 = jnp.maximum(x2 @ w2b.astype(jnp.float32) + b2, 0.0)
    assert jnp.allclose(y2, ref2, atol=5e-2, rtol=5e-2), float(
        jnp.max(jnp.abs(y2 - ref2)))

    # Exercise the standalone ReLU kernel (ragged batch + non-128 lane width).
    xr = jax.random.normal(jax.random.PRNGKey(2), (5, 130), jnp.float32)
    yr = jax.block_until_ready(relu_pallas(xr))
    assert jnp.allclose(yr, jnp.maximum(xr, 0.0))

    print("KERNEL_OK")
</pallas_src>

<mosaic_0001>
module attributes {stable_mosaic.version = 11 : i64} {
  func.func @_copy(%arg0: i32, %arg1: memref<8x128xf32, #tpu.memory_space<vmem>>, %arg2: memref<8x128xf32, #tpu.memory_space<vmem>>) attributes {dimension_semantics = [#tpu.dimension_semantics<arbitrary>], iteration_bounds = array<i64: 1>, scalar_prefetch = 0 : i64, scratch_operands = 0 : i64, tpu.core_type = #tpu.core_type<tc>, window_params = [{pipeline_mode = #tpu.pipeline_mode<synchronous>, transform_indices = @transform_0, window_bounds = array<i64: 8, 128>}, {pipeline_mode = #tpu.pipeline_mode<synchronous>, transform_indices = @transform_1, window_bounds = array<i64: 8, 128>}]} {
    %c0 = arith.constant 0 : index
    %c0_0 = arith.constant 0 : index
    %0 = vector.load %arg1[%c0, %c0_0] : memref<8x128xf32, #tpu.memory_space<vmem>>, vector<8x128xf32>
    %c0_1 = arith.constant 0 : index
    %c0_2 = arith.constant 0 : index
    %1 = vector.load %arg2[%c0_1, %c0_2] : memref<8x128xf32, #tpu.memory_space<vmem>>, vector<8x128xf32>
    tpu.vector_store %arg2[%c0_1, %c0_2], %0 {strides = array<i32>} : memref<8x128xf32, #tpu.memory_space<vmem>>, vector<8x128xf32>,
    return
  }
  func.func @transform_0(%arg0: i32) -> (i32, i32) {
    %c0_i32 = arith.constant 0 : i32
    %c0_i32_0 = arith.constant 0 : i32
    %c0_i32_1 = arith.constant 0 : i32
    return %c0_i32, %c0_i32_0 : i32, i32
  }
  func.func @transform_1(%arg0: i32) -> (i32, i32) {
    %c0_i32 = arith.constant 0 : i32
    %c0_i32_0 = arith.constant 0 : i32
    %c0_i32_1 = arith.constant 0 : i32
    return %c0_i32, %c0_i32_0 : i32, i32
  }
}

module attributes {stable_mosaic.version = 11 : i64} {
  func.func @_fused_mlp_kernel(%arg0: i32, %arg1: memref<8x128xf32, #tpu.memory_space<vmem>>, %arg2: memref<128x128xbf16, #tpu.memory_space<vmem>>, %arg3: memref<1x128xf32, #tpu.memory_space<vmem>>, %arg4: memref<128x128xbf16, #tpu.memory_space<vmem>>, %arg5: memref<1x128xf32, #tpu.memory_space<vmem>>, %arg6: memref<8x128xf32, #tpu.memory_space<vmem>>) attributes {dimension_semantics = [#tpu.dimension_semantics<parallel>], iteration_bounds = array<i64: 1>, scalar_prefetch = 0 : i64, scratch_operands = 0 : i64, tpu.core_type = #tpu.core_type<tc>, window_params = [{transform_indices = @transform_0, window_bounds = array<i64: 8, 128>}, {pipeline_mode = #tpu.pipeline_mode<synchronous>, transform_indices = @transform_1, window_bounds = array<i64: 128, 128>}, {pipeline_mode = #tpu.pipeline_mode<synchronous>, transform_indices = @transform_2, window_bounds = array<i64: 1, 128>}, {pipeline_mode = #tpu.pipeline_mode<synchronous>, transform_indices = @transform_3, window_bounds = array<i64: 128, 128>}, {pipeline_mode = #tpu.pipeline_mode<synchronous>, transform_indices = @transform_4, window_bounds = array<i64: 1, 128>}, {transform_indices = @transform_5, window_bounds = array<i64: 8, 128>}]} {
    %c0 = arith.constant 0 : index
    %c0_0 = arith.constant 0 : index
    %0 = vector.load %arg1[%c0, %c0_0] : memref<8x128xf32, #tpu.memory_space<vmem>>, vector<8x128xf32>
    %1 = arith.truncf %0 : vector<8x128xf32> to vector<8x128xbf16>
    %c0_1 = arith.constant 0 : index
    %c0_2 = arith.constant 0 : index
    %2 = vector.load %arg2[%c0_1, %c0_2] : memref<128x128xbf16, #tpu.memory_space<vmem>>, vector<128x128xbf16>
    %cst = arith.constant dense<0.000000e+00> : vector<8x128xf32>
    %3 = tpu.matmul %1, %2, %cst {dimension_numbers = #tpu.dot_dimension_numbers<[1], [0], [0], [1], [0, 0, 1, 1], [], []>} : vector<8x128xbf16>, vector<128x128xbf16>, vector<8x128xf32> -> vector<8x128xf32>
    %c0_3 = arith.constant 0 : index
    %c0_4 = arith.constant 0 : index
    %4 = vector.load %arg3[%c0_3, %c0_4] : memref<1x128xf32, #tpu.memory_space<vmem>>, vector<1x128xf32>
    %5 = vector.broadcast %4 : vector<1x128xf32> to vector<8x128xf32>
    %6 = arith.addf %3, %5 : vector<8x128xf32>
    %cst_5 = arith.constant 0.000000e+00 : f32
    %7 = vector.broadcast %cst_5 : f32 to vector<8x128xf32>
    %8 = arith.maximumf %6, %7 : vector<8x128xf32>
    %9 = arith.truncf %8 : vector<8x128xf32> to vector<8x128xbf16>
    %c0_6 = arith.constant 0 : index
    %c0_7 = arith.constant 0 : index
    %10 = vector.load %arg4[%c0_6, %c0_7] : memref<128x128xbf16, #tpu.memory_space<vmem>>, vector<128x128xbf16>
    %cst_8 = arith.constant dense<0.000000e+00> : vector<8x128xf32>
    %11 = tpu.matmul %9, %10, %cst_8 {dimension_numbers = #tpu.dot_dimension_numbers<[1], [0], [0], [1], [0, 0, 1, 1], [], []>} : vector<8x128xbf16>, vector<128x128xbf16>, vector<8x128xf32> -> vector<8x128xf32>
    %c0_9 = arith.constant 0 : index
    %c0_10 = arith.constant 0 : index
    %12 = vector.load %arg5[%c0_9, %c0_10] : memref<1x128xf32, #tpu.memory_space<vmem>>, vector<1x128xf32>
    %13 = vector.broadcast %12 : vector<1x128xf32> to vector<8x128xf32>
    %14 = arith.addf %11, %13 : vector<8x128xf32>
    %c0_11 = arith.constant 0 : index
    %c0_12 = arith.constant 0 : index
    %15 = vector.load %arg6[%c0_11, %c0_12] : memref<8x128xf32, #tpu.memory_space<vmem>>, vector<8x128xf32>
    tpu.vector_store %arg6[%c0_11, %c0_12], %14 {strides = array<i32>} : memref<8x128xf32, #tpu.memory_space<vmem>>, vector<8x128xf32>,
    return
  }
  func.func @transform_0(%arg0: i32) -> (i32, i32) {
    %c0_i32 = arith.constant 0 : i32
    %c0_i32_0 = arith.constant 0 : i32
    return %arg0, %c0_i32 : i32, i32
  }
  func.func @transform_1(%arg0: i32) -> (i32, i32) {
    %c0_i32 = arith.constant 0 : i32
    %c0_i32_0 = arith.constant 0 : i32
    %c0_i32_1 = arith.constant 0 : i32
    return %c0_i32, %c0_i32_0 : i32, i32
  }
  func.func @transform_2(%arg0: i32) -> (i32, i32) {
    %c0_i32 = arith.constant 0 : i32
    %c0_i32_0 = arith.constant 0 : i32
    %c0_i32_1 = arith.constant 0 : i32
    return %c0_i32, %c0_i32_0 : i32, i32
  }
  func.func @transform_3(%arg0: i32) -> (i32, i32) {
    %c0_i32 = arith.constant 0 : i32
    %c0_i32_0 = arith.constant 0 : i32
    %c0_i32_1 = arith.constant 0 : i32
    return %c0_i32, %c0_i32_0 : i32, i32
  }
  func.func @transform_4(%arg0: i32) -> (i32, i32) {
    %c0_i32 = arith.constant 0 : i32
    %c0_i32_0 = arith.constant 0 : i32
    %c0_i32_1 = arith.constant 0 : i32
    return %c0_i32, %c0_i32_0 : i32, i32
  }
  func.func @transform_5(%arg0: i32) -> (i32, i32) {
    %c0_i32 = arith.constant 0 : i32
    %c0_i32_0 = arith.constant 0 : i32
    return %arg0, %c0_i32 : i32, i32
  }
}

</mosaic_0001>

<bundles_post_ra>
// kernel: tpu_custom_call.1
= control target key start
LH: loop header
LB: loop body
LE: loop exit
PB: predicated region body
PF: predicated region fallthrough
CT: control target
= control target key end

     0   :  { %6 = vsyncpa [#allocation3], 0  ;;  %s124_s0 = inlined_call_operand.hbm [shape: f32[8,128], index: 0, kind: input, shape index: {}]   ;;  %s125_s1 = inlined_call_operand.hbm [shape: f32[8,128], index: 1, kind: output, shape index: {}]  }
   0x1   :  { %7 = vsyncpa [#allocation4], 0  ;;  %s88_s6 = smov [#allocation2]   ;;  %s40_s10 = scalar_lea.hbm %s124_s0, 128 }
   0x2   :  { %s14_s7 = sshll.u32 %s88_s6, 4  ;;  %p41_p0 = scmp.ne.s32.totalorder %s124_s0, %s40_s10  ;;  %s15_s7 = int_to_ptr.vmem [resolvable:$true] %s14_s7 }
   0x3   :  { %p44_p1 = scmp.lt.u32.totalorder %s40_s10, %s124_s0 }
   0x5   :  { %p46_p2 = pnand %p44_p1, %p41_p0 }
   0x7   :  { %49 = shalt.err (!%p46_p2)
}
   0x8   :  { %s50_s15 = scalar_lea.vmem %s15_s7, 128  ;;  %p55_p4 = scmp.lt.s32.totalorder %s15_s7, %s15_s7 }
   0x9   :  { %p51_p3 = scmp.ne.s32.totalorder %s15_s7, %s50_s15  ;;  %p56_p5 = scmp.lt.s32.totalorder %s50_s15, %s50_s15 }
   0xb   :  { %p57_p6 = por %p56_p5, %p55_p4 }
   0xd   :  { %p58_p7 = pnand %p57_p6, %p51_p3 }
   0xf   :  { %61 = shalt.err (!%p58_p7)
}
  0x10   :  { %17 = dma.hbm_to_vmem [thread:$0]  %s124_s0, 128, %s15_s7, [#allocation3]  }
  0x11   :  { %84 = dma.done.wait [#allocation3], 128  }
  0x12   :  { %85 = vsyncadd [#allocation3], 4294967168  ;;  %s89_s18 = smov [#allocation5]   ;;  %v21_v0 = vld [vmem:[#allocation2] sm:$0xff] }
  0x13   :  { %s29_s19 = sshll.u32 %s89_s18, 4  ;;  %22 = vst [vmem:[#allocation5] sm:$0xff] %v21_v0  ;;  %s30_s19 = int_to_ptr.vmem [resolvable:$true] %s29_s19 }
  0x14   :  { %s62_s20 = scalar_lea.vmem %s30_s19, 128  ;;  %p67_p9 = scmp.lt.s32.totalorder %s30_s19, %s30_s19 }
  0x15   :  { %p63_p8 = scmp.ne.s32.totalorder %s30_s19, %s62_s20  ;;  %p68_p10 = scmp.lt.s32.totalorder %s62_s20, %s62_s20 }
  0x17   :  { %p69_p11 = por %p68_p10, %p67_p9 }
  0x19   :  { %p70_p12 = pnand %p69_p11, %p63_p8 }
  0x1b   :  { %73 = shalt.err (!%p70_p12)
}
  0x1c   :  { %s74_s23 = scalar_lea.hbm %s125_s1, 128 }
  0x1d   :  { %p75_p13 = scmp.ne.s32.totalorder %s125_s1, %s74_s23  ;;  %p78_p0 = scmp.lt.u32.totalorder %s74_s23, %s125_s1 }
  0x1f   :  { %p80_p1 = pnand %p78_p0, %p75_p13 }
  0x21   :  { %83 = shalt.err (!%p80_p1)
}
  0x22   :  { %32 = dma.vmem_to_hbm [thread:$0]  %s30_s19, 128, %s125_s1, [#allocation4]  }
  0x23   :  { %86 = dma.done.wait [#allocation4], 128  }
  0x24   :  { %87 = vsyncadd [#allocation4], 4294967168 }
  0x25   :  { %36 = vsyncpa [#allocation3], 1 }
  0x26   :  { %37 = vsyncpa [#allocation4], 1 }

// kernel: fwd.1
= control target key start
LH: loop header
LB: loop body
LE: loop exit
PB: predicated region body
PF: predicated region fallthrough
CT: control target
= control target key end

     0   :  { %10 = vsyncpa [#allocation3], 0  ;;  %s546_s0 = inlined_call_operand.vmem [shape: f32[8,128], index: 0, kind: input, shape index: {}]   ;;  %s547_s1 = inlined_call_operand.hbm [shape: bf16[128,128], index: 1, kind: input, shape index: {}]   ;;  %s548_s2 = inlined_call_operand.vmem [shape: f32[1,128], index: 2, kind: input, shape index: {}]   ;;  %s549_s3 = inlined_call_operand.hbm [shape: bf16[128,128], index: 3, kind: input, shape index: {}]   ;;  %s550_s4 = inlined_call_operand.vmem [shape: f32[1,128], index: 4, kind: input, shape index: {}]   ;;  %s551_s5 = inlined_call_operand.hbm [shape: f32[8,128], index: 5, kind: output, shape index: {}]  }
   0x1   :  { %11 = vsyncpa [#allocation6], 0 }
   0x2   :  { %12 = vsyncpa [#allocation4], 0  ;;  %s464_s18 = smov [#allocation2]   ;;  %s392_s22 = scalar_lea.hbm %s547_s1, 1024 }
   0x3   :  { %s20_s19 = sshll.u32 %s464_s18, 4  ;;  %p393_p0 = scmp.ne.s32.totalorder %s547_s1, %s392_s22  ;;  %s21_s19 = int_to_ptr.vmem [resolvable:$true] %s20_s19 }
   0x4   :  { %p396_p1 = scmp.lt.u32.totalorder %s392_s22, %s547_s1 }
   0x6   :  { %p398_p2 = pnand %p396_p1, %p393_p0 }
   0x8   :  { %401 = shalt.err (!%p398_p2)
}
   0x9   :  { %s402_s27 = scalar_lea.vmem %s21_s19, 1024  ;;  %p407_p4 = scmp.lt.s32.totalorder %s21_s19, %s21_s19 }
   0xa   :  { %p403_p3 = scmp.ne.s32.totalorder %s21_s19, %s402_s27  ;;  %p408_p5 = scmp.lt.s32.totalorder %s402_s27, %s402_s27 }
   0xc   :  { %p409_p6 = por %p408_p5, %p407_p4 }
   0xe   :  { %p410_p7 = pnand %p409_p6, %p403_p3 }
  0x10   :  { %413 = shalt.err (!%p410_p7)
}
  0x11   :  { %s465_s28 = smov 64   ;;  %s466_s29 = smov 4  }
  0x12   :  { %26 = dma.hbm_to_vmem [thread:$0]  %s547_s1, 1024, %s21_s19, [#allocation3], %s465_s28, %s465_s28, %s466_s29  }
  0x13   :  { %s467_s7 = smov [#allocation5]   ;;  %s414_s11 = scalar_lea.hbm %s549_s3, 1024 }
  0x14   :  { %s34_s8 = sshll.u32 %s467_s7, 4  ;;  %p415_p8 = scmp.ne.s32.totalorder %s549_s3, %s414_s11  ;;  %s35_s8 = int_to_ptr.vmem [resolvable:$true] %s34_s8 }
  0x15   :  { %p418_p9 = scmp.lt.u32.totalorder %s414_s11, %s549_s3 }
  0x17   :  { %p420_p10 = pnand %p418_p9, %p415_p8 }
  0x19   :  { %423 = shalt.err (!%p420_p10)
}
  0x1a   :  { %s424_s16 = scalar_lea.vmem %s35_s8, 1024  ;;  %p429_p12 = scmp.lt.s32.totalorder %s35_s8, %s35_s8 }
  0x1b   :  { %p425_p11 = scmp.ne.s32.totalorder %s35_s8, %s424_s16  ;;  %p430_p13 = scmp.lt.s32.totalorder %s424_s16, %s424_s16 }
  0x1d   :  { %p431_p0 = por %p430_p13, %p429_p12 }
  0x1f   :  { %p432_p1 = pnand %p431_p0, %p425_p11 }
  0x21   :  { %435 = shalt.err (!%p432_p1)
}
  0x22   :  { %40 = dma.hbm_to_vmem [thread:$0]  %s549_s3, 1024, %s35_s8, [#allocation6], %s465_s28, %s465_s28, %s466_s29  }
  0x23   :  { %458 = dma.done.wait [#allocation3], 1024  }
  0x24   :  { %459 = vsyncadd [#allocation3], 4294966272 }
  0x25   :  { %460 = dma.done.wait [#allocation6], 1024  }
  0x26   :  { %461 = vsyncadd [#allocation6], 4294966272  ;;  %v468_v0 = vmov 0.0   ;;  %vm469_vm0 = vmmov 0   ;;  %v376_v1 = vld [vmem:[#allocation2] sm:$0xff]   ;;  %v377_v2 = vld [vmem:[#allocation2 + $0x8] sm:$0xff]  }
  0x27   :  { %329 = vmatprep.subr.bf16.mxu0 %v468_v0  ;;  %345 = vmatprep.mubr.msk.bf16.mxu0 %vm469_vm0, %v468_v0  ;;  %v378_v3 = vld [vmem:[#allocation2 + $0x10] sm:$0xff]   ;;  %v384_v4 = vld [vmem:[#allocation5] sm:$0xff]   ;;  %v379_v5 = vld [vmem:[#allocation2 + $0x18] sm:$0xff]   ;;  %s470_s22 = smov [#allocation7]  }
  0x28   :  { %349 = vmatprep.subr.bf16.mxu1 %v468_v0  ;;  %365 = vmatprep.mubr.msk.bf16.mxu1 %vm469_vm0, %v468_v0  ;;  %v385_v6 = vld [vmem:[#allocation5 + $0x8] sm:$0xff]   ;;  %v380_v7 = vld [vmem:[#allocation2 + $0x20] sm:$0xff]   ;;  %v386_v8 = vld [vmem:[#allocation5 + $0x10] sm:$0xff]   ;;  %s283_s23 = sshll.u32 %s470_s22, 4  ;;  %s284_s23 = int_to_ptr.vmem [resolvable:$true] %s283_s23 }
  0x29   :  { %330 = vmatpush3.bf16.msra.mxu0 %v376_v1  ;;  %350 = vmatpush3.bf16.msra.mxu1 %v384_v4  ;;  %v381_v9 = vld [vmem:[#allocation2 + $0x28] sm:$0xff]   ;;  %v387_v10 = vld [vmem:[#allocation5 + $0x18] sm:$0xff]   ;;  %v382_v11 = vld [vmem:[#allocation2 + $0x30] sm:$0xff]   ;;  %p441_p3 = scmp.lt.s32.totalorder %s284_s23, %s284_s23 }
  0x2a   :  { %331 = vmatprep.subr.bf16.mxu0 %v468_v0  ;;  %351 = vmatprep.subr.bf16.mxu1 %v468_v0  ;;  %v388_v12 = vld [vmem:[#allocation5 + $0x20] sm:$0xff]   ;;  %v383_v13 = vld [vmem:[#allocation2 + $0x38] sm:$0xff]   ;;  %v389_v15 = vld [vmem:[#allocation5 + $0x28] sm:$0xff]  }
  0x2b   :  { %v50_v14 = vld [vmem:[%s546_s0] sm:$0xff]  ;;  %v390_v17 = vld [vmem:[#allocation5 + $0x30] sm:$0xff]   ;;  %v391_v18 = vld [vmem:[#allocation5 + $0x38] sm:$0xff]  }
  0x2c   :  { %v51_v16 = vpack.c.bf16 %v50_v14, %v50_v14  ;;  %v293_v19 = vld [vmem:[%s548_s2] ss:$0 sm:$0xff]  ;;  %s436_s2 = scalar_lea.vmem %s284_s23, 128 }
  0x2d   :  { %332 = vmatpush3.bf16.msra.mxu0 %v377_v2  ;;  %352 = vmatpush3.bf16.msra.mxu1 %v385_v6  ;;  %v302_v27 = vld [vmem:[%s550_s4] ss:$0 sm:$0xff]  ;;  %p437_p2 = scmp.ne.s32.totalorder %s284_s23, %s436_s2  ;;  %p442_p4 = scmp.lt.s32.totalorder %s436_s2, %s436_s2 }
  0x2e   :  { %333 = vmatprep.subr.bf16.mxu0 %v468_v0  ;;  %353 = vmatprep.subr.bf16.mxu1 %v468_v0 }
  0x2f   :  { %p443_p5 = por %p442_p4, %p441_p3 }
  0x31   :  { %334 = vmatpush3.bf16.msra.mxu0 %v378_v3  ;;  %354 = vmatpush3.bf16.msra.mxu1 %v386_v8  ;;  %p444_p6 = pnand %p443_p5, %p437_p2 }
  0x32   :  { %335 = vmatprep.subr.bf16.mxu0 %v468_v0  ;;  %355 = vmatprep.subr.bf16.mxu1 %v468_v0 }
  0x35   :  { %336 = vmatpush3.bf16.msra.mxu0 %v379_v5  ;;  %356 = vmatpush3.bf16.msra.mxu1 %v387_v10 }
  0x36   :  { %337 = vmatprep.subr.bf16.mxu0 %v468_v0  ;;  %357 = vmatprep.subr.bf16.mxu1 %v468_v0 }
  0x39   :  { %338 = vmatpush3.bf16.msra.mxu0 %v380_v7  ;;  %358 = vmatpush3.bf16.msra.mxu1 %v388_v12 }
  0x3a   :  { %339 = vmatprep.subr.bf16.mxu0 %v468_v0  ;;  %359 = vmatprep.subr.bf16.mxu1 %v468_v0 }
  0x3d   :  { %340 = vmatpush3.bf16.msra.mxu0 %v381_v9  ;;  %360 = vmatpush3.bf16.msra.mxu1 %v389_v15 }
  0x3e   :  { %341 = vmatprep.subr.bf16.mxu0 %v468_v0  ;;  %361 = vmatprep.subr.bf16.mxu1 %v468_v0 }
  0x41   :  { %342 = vmatpush3.bf16.msra.mxu0 %v382_v11  ;;  %362 = vmatpush3.bf16.msra.mxu1 %v390_v17 }
  0x42   :  { %343 = vmatprep.subr.bf16.mxu0 %v468_v0  ;;  %363 = vmatprep.subr.bf16.mxu1 %v468_v0 }
  0x45   :  { %344 = vmatpush3.bf16.msra.mxu0 %v383_v13  ;;  %364 = vmatpush3.bf16.msra.mxu1 %v391_v18 }
  0x48   :  { %346 = vmatmul.mubr.bf16.vlgmr.msra.gmra.mrb[0].mxu0 %v51_v16 }
 0x11b   :  { %v157_v20 = vpop.f32.mrb[0].mxu0 }
 0x11c   :  { %v158_v21 = vadd.f32 %v293_v19, %v157_v20  ;;  %v347_v22 = vpop.f32.mrb[1].mxu0 }
 0x11d   :  { %v160_v23 = vpop.f32.mrb[2].mxu0 }
 0x11e   :  { %v163_v24 = vmax.f32 %v158_v21, 0.0  ;;  %v348_v25 = vpop.f32.mrb[3].mxu0 }
 0x120   :  { %v164_v26 = vpack.c.bf16 %v163_v24, %v163_v24 }
 0x122   :  { %366 = vmatmul.mubr.bf16.vlgmr.msra.gmra.mrb[0].mxu1 %v164_v26 }
 0x1f5   :  { %v270_v28 = vpop.f32.mrb[0].mxu1 }
 0x1f6   :  { %v271_v29 = vadd.f32 %v302_v27, %v270_v28  ;;  %v367_v30 = vpop.f32.mrb[1].mxu1 }
 0x1f7   :  { %v273_v31 = vpop.f32.mrb[2].mxu1 }
 0x1f8   :  { %276 = vst [vmem:[#allocation7] sm:$0xff] %v271_v29  ;;  %v368_v32 = vpop.f32.mrb[3].mxu1 }
 0x1f9   :  { %447 = shalt.err (!%p444_p6)
}
 0x1fa   :  { %s448_s4 = scalar_lea.hbm %s551_s5, 128 }
 0x1fb   :  { %p449_p7 = scmp.ne.s32.totalorder %s551_s5, %s448_s4  ;;  %p452_p8 = scmp.lt.u32.totalorder %s448_s4, %s551_s5 }
 0x1fd   :  { %p454_p9 = pnand %p452_p8, %p449_p7 }
 0x1ff   :  { %457 = shalt.err (!%p454_p9)
}
 0x200   :  { %286 = dma.vmem_to_hbm [thread:$0]  %s284_s23, 128, %s551_s5, [#allocation4]  }
 0x201   :  { %462 = dma.done.wait [#allocation4], 128  }
 0x202   :  { %463 = vsyncadd [#allocation4], 4294967168 }
 0x203   :  { %290 = vsyncpa [#allocation3], 1 }
 0x204   :  { %291 = vsyncpa [#allocation6], 1 }
 0x205   :  { %292 = vsyncpa [#allocation4], 1 }

</bundles_post_ra>
